<compile_context>
chip_gen: v7x
topology: tpu7x:2x2x1
jax: 0.10.0
libtpu: 0.0.40
codegen_flags: <defaults>
</compile_context>

<pallas_src>
import jax
import jax.numpy as jnp
from jax import lax
from jax.experimental import pallas as pl
from jax.experimental.pallas import tpu as pltpu

_SUBLANE = 8  # f32 sublane count


def rnn_recurrence_kernel(x_ref, h0_ref, wih_ref, whh_ref, b_ref,
                          hfin_ref, xp_sc):
    """Whole-sequence tanh RNN recurrence in a single invocation.

    x_ref:    (T*Bp, H)  time-major embedded inputs, batch padded to Bp
    h0_ref:   (Bp, H)    initial hidden state
    wih_ref:  (H, H)     W_ih^T
    whh_ref:  (H, H)     W_hh^T
    b_ref:    (1, H)     b_ih + b_hh
    hfin_ref: (Bp, H)    final hidden state (output)
    xp_sc:    (T*Bp, H)  VMEM scratch: precomputed x@W_ih^T + bias
    """
    TB, H = x_ref.shape
    Bp = h0_ref.shape[0]
    T = TB // Bp  # static Python int

    # Pre-phase (off the sequential critical path): one big MXU matmul
    # computes the input projection + combined bias for every timestep.
    xp_sc[...] = (
        jnp.dot(x_ref[...], wih_ref[...], preferred_element_type=jnp.float32)
        + b_ref[...]
    )

    whh = whh_ref[...]  # keep W_hh^T resident in vregs/VMEM across the loop

    def step(t, h):
        start = pl.multiple_of(t * Bp, Bp)
        x_t = xp_sc[pl.ds(start, Bp), :]                      # (Bp, H)
        return jnp.tanh(
            x_t + jnp.dot(h, whh, preferred_element_type=jnp.float32)
        )

    hfin_ref[...] = lax.fori_loop(0, T, step, h0_ref[...], unroll=True)


def rnn_forward(tokens, hidden, params):
    """tokens: (B, T) int32, hidden: (num_layers=1, B, H) f32.

    Returns (logits (B, O), hidden (1, B, H)) matching the PyTorch module.
    """
    emb = params["embed"]               # (V, H)
    w_ih = params["w_ih"]               # (H, H)  (PyTorch weight_ih_l0)
    w_hh = params["w_hh"]               # (H, H)  (PyTorch weight_hh_l0)
    b_ih = params["b_ih"]               # (H,)
    b_hh = params["b_hh"]               # (H,)
    w_fc = params["w_fc"]               # (O, H)
    b_fc = params["b_fc"]               # (O,)

    B, T = tokens.shape
    H = emb.shape[1]

    # Pad batch to a sublane multiple so tiles fill whole vregs.
    Bp = max(_SUBLANE, ((B + _SUBLANE - 1) // _SUBLANE) * _SUBLANE)

    # Glue (XLA): embedding gather + layout transform to time-major, padded.
    x_emb = jnp.take(emb, tokens, axis=0)                     # (B, T, H)
    x_tm = jnp.transpose(x_emb, (1, 0, 2))                    # (T, B, H)
    x_tm = jnp.pad(x_tm, ((0, 0), (0, Bp - B), (0, 0)))       # (T, Bp, H)
    x_flat = x_tm.reshape(T * Bp, H)                          # (T*Bp, H)

    h0 = jnp.pad(hidden[0], ((0, Bp - B), (0, 0)))            # (Bp, H)
    wih_t = w_ih.T                                            # (H, H)
    whh_t = w_hh.T                                            # (H, H)
    b = (b_ih + b_hh).reshape(1, H)                           # (1, H)

    h_fin_p = pl.pallas_call(
        rnn_recurrence_kernel,
        out_shape=jax.ShapeDtypeStruct((Bp, H), jnp.float32),
        grid_spec=pltpu.PrefetchScalarGridSpec(
            num_scalar_prefetch=0,
            grid=(1,),
            in_specs=[
                pl.BlockSpec((T * Bp, H), lambda i: (0, 0)),  # x (projected in-kernel)
                pl.BlockSpec((Bp, H), lambda i: (0, 0)),      # h0
                pl.BlockSpec((H, H), lambda i: (0, 0)),       # W_ih^T
                pl.BlockSpec((H, H), lambda i: (0, 0)),       # W_hh^T
                pl.BlockSpec((1, H), lambda i: (0, 0)),       # combined bias
            ],
            out_specs=pl.BlockSpec((Bp, H), lambda i: (0, 0)),
            scratch_shapes=[pltpu.VMEM((T * Bp, H), jnp.float32)],
        ),
        compiler_params=pltpu.CompilerParams(
            dimension_semantics=("arbitrary",),  # sequential recurrence
        ),
    )(x_flat, h0, wih_t, whh_t, b)

    h_fin = h_fin_p[:B]                                       # (B, H)

    # Lane-sparse FC head (O=14) stays in XLA per performance guidance.
    logits = h_fin @ w_fc.T + b_fc                            # (B, O)

    # PyTorch nn.RNN returns hidden as (num_layers, B, H).
    return logits, h_fin[None]


def init_params(key, vocab_size, hidden_size, output_size):
    k = jax.random.split(key, 7)
    s = 1.0 / jnp.sqrt(hidden_size)
    return {
        "embed": jax.random.normal(k[0], (vocab_size, hidden_size), jnp.float32),
        "w_ih": jax.random.uniform(k[1], (hidden_size, hidden_size), jnp.float32, -s, s),
        "w_hh": jax.random.uniform(k[2], (hidden_size, hidden_size), jnp.float32, -s, s),
        "b_ih": jax.random.uniform(k[3], (hidden_size,), jnp.float32, -s, s),
        "b_hh": jax.random.uniform(k[4], (hidden_size,), jnp.float32, -s, s),
        "w_fc": jax.random.uniform(k[5], (output_size, hidden_size), jnp.float32, -s, s),
        "b_fc": jax.random.uniform(k[6], (output_size,), jnp.float32, -s, s),
    }


if __name__ == "__main__":
    text = "hello pytorch rnn example"
    chars = sorted(set(text))
    vocab_size = len(chars)          # == input_size == output_size (14)
    hidden_size = 128
    num_layers = 1

    batch = 2
    seq = 8

    key = jax.random.PRNGKey(0)
    pkey, xkey = jax.random.split(key)
    params = init_params(pkey, vocab_size, hidden_size, vocab_size)

    tokens = jax.random.randint(xkey, (batch, seq), 0, vocab_size, dtype=jnp.int32)
    hidden0 = jnp.zeros((num_layers, batch, hidden_size), jnp.float32)

    logits, hidden = rnn_forward(tokens, hidden0, params)
    jax.block_until_ready((logits, hidden))

    # Pure-JAX reference (same params, same recurrence as PyTorch nn.RNN).
    def ref(tokens, hidden0, p):
        x = jnp.take(p["embed"], tokens, axis=0)              # (B, T, H)
        h = hidden0[0]
        for t in range(x.shape[1]):
            h = jnp.tanh(x[:, t] @ p["w_ih"].T + p["b_ih"]
                         + h @ p["w_hh"].T + p["b_hh"])
        out = h @ p["w_fc"].T + p["b_fc"]
        return out, h[None]

    ref_logits, ref_hidden = ref(tokens, hidden0, params)
    assert jnp.allclose(logits, ref_logits, atol=1e-4, rtol=1e-4)
    assert jnp.allclose(hidden, ref_hidden, atol=1e-4, rtol=1e-4)

    print("KERNEL_OK")
</pallas_src>

<mosaic_0001>
module attributes {stable_mosaic.version = 11 : i64} {
  func.func @rnn_recurrence_kernel(%arg0: i32, %arg1: memref<64x128xf32, #tpu.memory_space<vmem>>, %arg2: memref<8x128xf32, #tpu.memory_space<vmem>>, %arg3: memref<128x128xf32, #tpu.memory_space<vmem>>, %arg4: memref<128x128xf32, #tpu.memory_space<vmem>>, %arg5: memref<1x128xf32, #tpu.memory_space<vmem>>, %arg6: memref<8x128xf32, #tpu.memory_space<vmem>>, %arg7: memref<64x128xf32, #tpu.memory_space<vmem>>) attributes {dimension_semantics = [#tpu.dimension_semantics<arbitrary>], iteration_bounds = array<i64: 1>, scalar_prefetch = 0 : i64, scratch_operands = 1 : i64, tpu.core_type = #tpu.core_type<tc>, window_params = [{pipeline_mode = #tpu.pipeline_mode<synchronous>, transform_indices = @transform_0, window_bounds = array<i64: 64, 128>}, {pipeline_mode = #tpu.pipeline_mode<synchronous>, transform_indices = @transform_1, window_bounds = array<i64: 8, 128>}, {pipeline_mode = #tpu.pipeline_mode<synchronous>, transform_indices = @transform_2, window_bounds = array<i64: 128, 128>}, {pipeline_mode = #tpu.pipeline_mode<synchronous>, transform_indices = @transform_3, window_bounds = array<i64: 128, 128>}, {pipeline_mode = #tpu.pipeline_mode<synchronous>, transform_indices = @transform_4, window_bounds = array<i64: 1, 128>}, {pipeline_mode = #tpu.pipeline_mode<synchronous>, transform_indices = @transform_5, window_bounds = array<i64: 8, 128>}]} {
    %c0 = arith.constant 0 : index
    %c0_0 = arith.constant 0 : index
    %0 = vector.load %arg1[%c0, %c0_0] : memref<64x128xf32, #tpu.memory_space<vmem>>, vector<64x128xf32>
    %c0_1 = arith.constant 0 : index
    %c0_2 = arith.constant 0 : index
    %1 = vector.load %arg3[%c0_1, %c0_2] : memref<128x128xf32, #tpu.memory_space<vmem>>, vector<128x128xf32>
    %cst = arith.constant dense<0.000000e+00> : vector<64x128xf32>
    %2 = tpu.matmul %0, %1, %cst {dimension_numbers = #tpu.dot_dimension_numbers<[1], [0], [0], [1], [0, 0, 1, 1], [], []>} : vector<64x128xf32>, vector<128x128xf32>, vector<64x128xf32> -> vector<64x128xf32>
    %c0_3 = arith.constant 0 : index
    %c0_4 = arith.constant 0 : index
    %3 = vector.load %arg5[%c0_3, %c0_4] : memref<1x128xf32, #tpu.memory_space<vmem>>, vector<1x128xf32>
    %4 = vector.broadcast %3 : vector<1x128xf32> to vector<64x128xf32>
    %5 = arith.addf %2, %4 : vector<64x128xf32>
    %c0_5 = arith.constant 0 : index
    %c0_6 = arith.constant 0 : index
    %6 = vector.load %arg7[%c0_5, %c0_6] : memref<64x128xf32, #tpu.memory_space<vmem>>, vector<64x128xf32>
    tpu.vector_store %arg7[%c0_5, %c0_6], %5 {strides = array<i32>} : memref<64x128xf32, #tpu.memory_space<vmem>>, vector<64x128xf32>,
    %c0_7 = arith.constant 0 : index
    %c0_8 = arith.constant 0 : index
    %7 = vector.load %arg4[%c0_7, %c0_8] : memref<128x128xf32, #tpu.memory_space<vmem>>, vector<128x128xf32>
    %c0_9 = arith.constant 0 : index
    %c0_10 = arith.constant 0 : index
    %8 = vector.load %arg2[%c0_9, %c0_10] : memref<8x128xf32, #tpu.memory_space<vmem>>, vector<8x128xf32>
    %c0_i32 = arith.constant 0 : i32
    %c8_i32 = arith.constant 8 : i32
    %9 = arith.muli %c0_i32, %c8_i32 : i32
    %10 = tpu.assume_multiple %9, 8 : i32
    %11 = arith.index_cast %10 : i32 to index
    %c0_11 = arith.constant 0 : index
    %12 = vector.load %arg7[%11, %c0_11] : memref<64x128xf32, #tpu.memory_space<vmem>>, vector<8x128xf32>
    %cst_12 = arith.constant dense<0.000000e+00> : vector<8x128xf32>
    %13 = tpu.matmul %8, %7, %cst_12 {dimension_numbers = #tpu.dot_dimension_numbers<[1], [0], [0], [1], [0, 0, 1, 1], [], []>} : vector<8x128xf32>, vector<128x128xf32>, vector<8x128xf32> -> vector<8x128xf32>
    %14 = arith.addf %12, %13 : vector<8x128xf32>
    %15 = math.tanh %14 : vector<8x128xf32>
    %c1_i32 = arith.constant 1 : i32
    %c8_i32_13 = arith.constant 8 : i32
    %16 = arith.muli %c1_i32, %c8_i32_13 : i32
    %17 = tpu.assume_multiple %16, 8 : i32
    %18 = arith.index_cast %17 : i32 to index
    %c0_14 = arith.constant 0 : index
    %19 = vector.load %arg7[%18, %c0_14] : memref<64x128xf32, #tpu.memory_space<vmem>>, vector<8x128xf32>
    %cst_15 = arith.constant dense<0.000000e+00> : vector<8x128xf32>
    %20 = tpu.matmul %15, %7, %cst_15 {dimension_numbers = #tpu.dot_dimension_numbers<[1], [0], [0], [1], [0, 0, 1, 1], [], []>} : vector<8x128xf32>, vector<128x128xf32>, vector<8x128xf32> -> vector<8x128xf32>
    %21 = arith.addf %19, %20 : vector<8x128xf32>
    %22 = math.tanh %21 : vector<8x128xf32>
    %c2_i32 = arith.constant 2 : i32
    %c8_i32_16 = arith.constant 8 : i32
    %23 = arith.muli %c2_i32, %c8_i32_16 : i32
    %24 = tpu.assume_multiple %23, 8 : i32
    %25 = arith.index_cast %24 : i32 to index
    %c0_17 = arith.constant 0 : index
    %26 = vector.load %arg7[%25, %c0_17] : memref<64x128xf32, #tpu.memory_space<vmem>>, vector<8x128xf32>
    %cst_18 = arith.constant dense<0.000000e+00> : vector<8x128xf32>
    %27 = tpu.matmul %22, %7, %cst_18 {dimension_numbers = #tpu.dot_dimension_numbers<[1], [0], [0], [1], [0, 0, 1, 1], [], []>} : vector<8x128xf32>, vector<128x128xf32>, vector<8x128xf32> -> vector<8x128xf32>
    %28 = arith.addf %26, %27 : vector<8x128xf32>
    %29 = math.tanh %28 : vector<8x128xf32>
    %c3_i32 = arith.constant 3 : i32
    %c8_i32_19 = arith.constant 8 : i32
    %30 = arith.muli %c3_i32, %c8_i32_19 : i32
    %31 = tpu.assume_multiple %30, 8 : i32
    %32 = arith.index_cast %31 : i32 to index
    %c0_20 = arith.constant 0 : index
    %33 = vector.load %arg7[%32, %c0_20] : memref<64x128xf32, #tpu.memory_space<vmem>>, vector<8x128xf32>
    %cst_21 = arith.constant dense<0.000000e+00> : vector<8x128xf32>
    %34 = tpu.matmul %29, %7, %cst_21 {dimension_numbers = #tpu.dot_dimension_numbers<[1], [0], [0], [1], [0, 0, 1, 1], [], []>} : vector<8x128xf32>, vector<128x128xf32>, vector<8x128xf32> -> vector<8x128xf32>
    %35 = arith.addf %33, %34 : vector<8x128xf32>
    %36 = math.tanh %35 : vector<8x128xf32>
    %c4_i32 = arith.constant 4 : i32
    %c8_i32_22 = arith.constant 8 : i32
    %37 = arith.muli %c4_i32, %c8_i32_22 : i32
    %38 = tpu.assume_multiple %37, 8 : i32
    %39 = arith.index_cast %38 : i32 to index
    %c0_23 = arith.constant 0 : index
    %40 = vector.load %arg7[%39, %c0_23] : memref<64x128xf32, #tpu.memory_space<vmem>>, vector<8x128xf32>
    %cst_24 = arith.constant dense<0.000000e+00> : vector<8x128xf32>
    %41 = tpu.matmul %36, %7, %cst_24 {dimension_numbers = #tpu.dot_dimension_numbers<[1], [0], [0], [1], [0, 0, 1, 1], [], []>} : vector<8x128xf32>, vector<128x128xf32>, vector<8x128xf32> -> vector<8x128xf32>
    %42 = arith.addf %40, %41 : vector<8x128xf32>
    %43 = math.tanh %42 : vector<8x128xf32>
    %c5_i32 = arith.constant 5 : i32
    %c8_i32_25 = arith.constant 8 : i32
    %44 = arith.muli %c5_i32, %c8_i32_25 : i32
    %45 = tpu.assume_multiple %44, 8 : i32
    %46 = arith.index_cast %45 : i32 to index
    %c0_26 = arith.constant 0 : index
    %47 = vector.load %arg7[%46, %c0_26] : memref<64x128xf32, #tpu.memory_space<vmem>>, vector<8x128xf32>
    %cst_27 = arith.constant dense<0.000000e+00> : vector<8x128xf32>
    %48 = tpu.matmul %43, %7, %cst_27 {dimension_numbers = #tpu.dot_dimension_numbers<[1], [0], [0], [1], [0, 0, 1, 1], [], []>} : vector<8x128xf32>, vector<128x128xf32>, vector<8x128xf32> -> vector<8x128xf32>
    %49 = arith.addf %47, %48 : vector<8x128xf32>
    %50 = math.tanh %49 : vector<8x128xf32>
    %c6_i32 = arith.constant 6 : i32
    %c8_i32_28 = arith.constant 8 : i32
    %51 = arith.muli %c6_i32, %c8_i32_28 : i32
    %52 = tpu.assume_multiple %51, 8 : i32
    %53 = arith.index_cast %52 : i32 to index
    %c0_29 = arith.constant 0 : index
    %54 = vector.load %arg7[%53, %c0_29] : memref<64x128xf32, #tpu.memory_space<vmem>>, vector<8x128xf32>
    %cst_30 = arith.constant dense<0.000000e+00> : vector<8x128xf32>
    %55 = tpu.matmul %50, %7, %cst_30 {dimension_numbers = #tpu.dot_dimension_numbers<[1], [0], [0], [1], [0, 0, 1, 1], [], []>} : vector<8x128xf32>, vector<128x128xf32>, vector<8x128xf32> -> vector<8x128xf32>
    %56 = arith.addf %54, %55 : vector<8x128xf32>
    %57 = math.tanh %56 : vector<8x128xf32>
    %c7_i32 = arith.constant 7 : i32
    %c8_i32_31 = arith.constant 8 : i32
    %58 = arith.muli %c7_i32, %c8_i32_31 : i32
    %59 = tpu.assume_multiple %58, 8 : i32
    %60 = arith.index_cast %59 : i32 to index
    %c0_32 = arith.constant 0 : index
    %61 = vector.load %arg7[%60, %c0_32] : memref<64x128xf32, #tpu.memory_space<vmem>>, vector<8x128xf32>
    %cst_33 = arith.constant dense<0.000000e+00> : vector<8x128xf32>
    %62 = tpu.matmul %57, %7, %cst_33 {dimension_numbers = #tpu.dot_dimension_numbers<[1], [0], [0], [1], [0, 0, 1, 1], [], []>} : vector<8x128xf32>, vector<128x128xf32>, vector<8x128xf32> -> vector<8x128xf32>
    %63 = arith.addf %61, %62 : vector<8x128xf32>
    %64 = math.tanh %63 : vector<8x128xf32>
    %c8_i32_34 = arith.constant 8 : i32
    %c0_35 = arith.constant 0 : index
    %c0_36 = arith.constant 0 : index
    %65 = vector.load %arg6[%c0_35, %c0_36] : memref<8x128xf32, #tpu.memory_space<vmem>>, vector<8x128xf32>
    tpu.vector_store %arg6[%c0_35, %c0_36], %64 {strides = array<i32>} : memref<8x128xf32, #tpu.memory_space<vmem>>, vector<8x128xf32>,
    return
  }
  func.func @transform_0(%arg0: i32) -> (i32, i32) {
    %c0_i32 = arith.constant 0 : i32
    %c0_i32_0 = arith.constant 0 : i32
    %c0_i32_1 = arith.constant 0 : i32
    return %c0_i32, %c0_i32_0 : i32, i32
  }
  func.func @transform_1(%arg0: i32) -> (i32, i32) {
    %c0_i32 = arith.constant 0 : i32
    %c0_i32_0 = arith.constant 0 : i32
    %c0_i32_1 = arith.constant 0 : i32
    return %c0_i32, %c0_i32_0 : i32, i32
  }
  func.func @transform_2(%arg0: i32) -> (i32, i32) {
    %c0_i32 = arith.constant 0 : i32
    %c0_i32_0 = arith.constant 0 : i32
    %c0_i32_1 = arith.constant 0 : i32
    return %c0_i32, %c0_i32_0 : i32, i32
  }
  func.func @transform_3(%arg0: i32) -> (i32, i32) {
    %c0_i32 = arith.constant 0 : i32
    %c0_i32_0 = arith.constant 0 : i32
    %c0_i32_1 = arith.constant 0 : i32
    return %c0_i32, %c0_i32_0 : i32, i32
  }
  func.func @transform_4(%arg0: i32) -> (i32, i32) {
    %c0_i32 = arith.constant 0 : i32
    %c0_i32_0 = arith.constant 0 : i32
    %c0_i32_1 = arith.constant 0 : i32
    return %c0_i32, %c0_i32_0 : i32, i32
  }
  func.func @transform_5(%arg0: i32) -> (i32, i32) {
    %c0_i32 = arith.constant 0 : i32
    %c0_i32_0 = arith.constant 0 : i32
    %c0_i32_1 = arith.constant 0 : i32
    return %c0_i32, %c0_i32_0 : i32, i32
  }
}

</mosaic_0001>

<bundles_post_ra>
// kernel: tpu_custom_call.1
= control target key start
LH: loop header
LB: loop body
LE: loop exit
PB: predicated region body
PF: predicated region fallthrough
CT: control target
= control target key end

     0   :  { %10 = vsyncpa [#allocation4], 0  ;;  %s2005_s0 = inlined_call_operand.hbm [shape: f32[64,128], index: 0, kind: input, shape index: {}]   ;;  %s2006_s1 = inlined_call_operand.hbm [shape: f32[8,128], index: 1, kind: input, shape index: {}]   ;;  %s2007_s2 = inlined_call_operand.hbm [shape: f32[128,128], index: 2, kind: input, shape index: {}]   ;;  %s2008_s3 = inlined_call_operand.hbm [shape: f32[128,128], index: 3, kind: input, shape index: {}]   ;;  %s2009_s4 = inlined_call_operand.vmem [shape: f32[1,128], index: 4, kind: input, shape index: {}]   ;;  %s2010_s5 = inlined_call_operand.hbm [shape: f32[8,128], index: 5, kind: output, shape index: {}]  }
   0x1   :  { %11 = vsyncpa [#allocation7], 0 }
   0x2   :  { %12 = vsyncpa [#allocation10], 0 }
   0x3   :  { %13 = vsyncpa [#allocation5], 0  ;;  %s1697_s18 = smov [#allocation6]   ;;  %s1698_s20 = smov [#allocation3]  }
   0x4   :  { %s32_s19 = sshll.u32 %s1697_s18, 4  ;;  %s19_s21 = sshll.u32 %s1698_s20, 4  ;;  %s33_s19 = int_to_ptr.vmem [resolvable:$true] %s32_s19  ;;  %s1737_s21 = int_to_ptr.vmem [resolvable:$true] %s19_s21 }
   0x5   :  { %s1579_s24 = scalar_lea.hbm %s2006_s1, 128 }
   0x6   :  { %p1580_p0 = scmp.ne.s32.totalorder %s2006_s1, %s1579_s24  ;;  %p1583_p1 = scmp.lt.u32.totalorder %s1579_s24, %s2006_s1 }
   0x8   :  { %p1585_p2 = pnand %p1583_p1, %p1580_p0 }
   0xa   :  { %1588 = shalt.err (!%p1585_p2)
}
   0xb   :  { %s1589_s29 = scalar_lea.vmem %s33_s19, 128  ;;  %p1594_p4 = scmp.lt.s32.totalorder %s33_s19, %s33_s19 }
   0xc   :  { %p1590_p3 = scmp.ne.s32.totalorder %s33_s19, %s1589_s29  ;;  %p1595_p5 = scmp.lt.s32.totalorder %s1589_s29, %s1589_s29 }
   0xe   :  { %p1596_p6 = por %p1595_p5, %p1594_p4 }
  0x10   :  { %p1597_p7 = pnand %p1596_p6, %p1590_p3 }
  0x12   :  { %1600 = shalt.err (!%p1597_p7)
}
  0x13   :  { %35 = dma.hbm_to_vmem [thread:$0]  %s2006_s1, 128, %s33_s19, [#allocation7]  }
  0x14   :  { %s1601_s9 = scalar_lea.hbm %s2005_s0, 1024 }
  0x15   :  { %p1602_p8 = scmp.ne.s32.totalorder %s2005_s0, %s1601_s9  ;;  %p1605_p9 = scmp.lt.u32.totalorder %s1601_s9, %s2005_s0 }
  0x17   :  { %p1607_p10 = pnand %p1605_p9, %p1602_p8 }
  0x19   :  { %1610 = shalt.err (!%p1607_p10)
}
  0x1a   :  { %s1611_s14 = scalar_lea.vmem %s1737_s21, 1024  ;;  %p1616_p12 = scmp.lt.s32.totalorder %s1737_s21, %s1737_s21 }
  0x1b   :  { %p1612_p11 = scmp.ne.s32.totalorder %s1737_s21, %s1611_s14  ;;  %p1617_p13 = scmp.lt.s32.totalorder %s1611_s14, %s1611_s14 }
  0x1d   :  { %p1618_p0 = por %p1617_p13, %p1616_p12 }
  0x1f   :  { %p1619_p1 = pnand %p1618_p0, %p1612_p11 }
  0x21   :  { %1622 = shalt.err (!%p1619_p1)
}
  0x22   :  { %s1699_s1 = smov 128   ;;  %s1700_s15 = smov 8  }
  0x23   :  { %25 = dma.hbm_to_vmem [thread:$0]  %s2005_s0, 1024, %s1737_s21, [#allocation4], %s1699_s1, %s1699_s1, %s1700_s15  }
  0x24   :  { %s1701_s18 = smov [#allocation8]   ;;  %s1702_s20 = smov [#allocation9]  }
  0x25   :  { %s41_s19 = sshll.u32 %s1701_s18, 4  ;;  %s53_s22 = sshll.u32 %s1702_s20, 4  ;;  %s42_s19 = int_to_ptr.vmem [resolvable:$true] %s41_s19  ;;  %s1771_s22 = int_to_ptr.vmem [resolvable:$true] %s53_s22 }
  0x26   :  { %s1623_s25 = scalar_lea.hbm %s2007_s2, 2048 }
  0x27   :  { %p1624_p2 = scmp.ne.s32.totalorder %s2007_s2, %s1623_s25  ;;  %p1627_p3 = scmp.lt.u32.totalorder %s1623_s25, %s2007_s2 }
  0x29   :  { %p1629_p4 = pnand %p1627_p3, %p1624_p2 }
  0x2b   :  { %1632 = shalt.err (!%p1629_p4)
}
  0x2c   :  { %s1633_s0 = scalar_lea.vmem %s42_s19, 2048  ;;  %p1638_p6 = scmp.lt.s32.totalorder %s42_s19, %s42_s19 }
  0x2d   :  { %p1634_p5 = scmp.ne.s32.totalorder %s42_s19, %s1633_s0  ;;  %p1639_p7 = scmp.lt.s32.totalorder %s1633_s0, %s1633_s0 }
  0x2f   :  { %p1640_p8 = por %p1639_p7, %p1638_p6 }
  0x31   :  { %p1641_p9 = pnand %p1640_p8, %p1634_p5 }
  0x33   :  { %1644 = shalt.err (!%p1641_p9)
}
  0x34   :  { %47 = dma.hbm_to_vmem [thread:$0]  %s2007_s2, 2048, %s42_s19, [#allocation7], %s1699_s1, %s1699_s1, %s1700_s15  }
  0x35   :  { %s1645_s8 = scalar_lea.hbm %s2008_s3, 2048 }
  0x36   :  { %p1646_p10 = scmp.ne.s32.totalorder %s2008_s3, %s1645_s8  ;;  %p1649_p11 = scmp.lt.u32.totalorder %s1645_s8, %s2008_s3 }
  0x38   :  { %p1651_p12 = pnand %p1649_p11, %p1646_p10 }
  0x3a   :  { %1654 = shalt.err (!%p1651_p12)
}
  0x3b   :  { %s1655_s13 = scalar_lea.vmem %s1771_s22, 2048  ;;  %p1660_p0 = scmp.lt.s32.totalorder %s1771_s22, %s1771_s22 }
  0x3c   :  { %p1656_p13 = scmp.ne.s32.totalorder %s1771_s22, %s1655_s13  ;;  %p1661_p1 = scmp.lt.s32.totalorder %s1655_s13, %s1655_s13 }
  0x3e   :  { %p1662_p2 = por %p1661_p1, %p1660_p0 }
  0x40   :  { %p1663_p3 = pnand %p1662_p2, %p1656_p13 }
  0x42   :  { %1666 = shalt.err (!%p1663_p3)
}
  0x43   :  { %59 = dma.hbm_to_vmem [thread:$0]  %s2008_s3, 2048, %s1771_s22, [#allocation10], %s1699_s1, %s1699_s1, %s1700_s15  }
  0x44   :  { %1689 = dma.done.wait [#allocation4], 1024  }
  0x45   :  { %1690 = vsyncadd [#allocation4], 4294966272 }
  0x46   :  { %1691 = dma.done.wait [#allocation7], 2176  }
  0x47   :  { %1692 = vsyncadd [#allocation7], 4294965120 }
  0x48   :  { %1693 = dma.done.wait [#allocation10], 2048  }
  0x49   :  { %1694 = vsyncadd [#allocation10], 4294965248  ;;  %v1703_v0 = vmov 0.0|0.0   ;;  %vm1704_vm0 = vmmov 0   ;;  %v1705_v1 = vmov 0.0   ;;  %v82_v2 = vld [vmem:[#allocation8] sm:$0xff] }
  0x4a   :  { %1361 = vmatprep.subr.bf16.mxu1 %v1703_v0  ;;  %1081 = vmatprep.mubr.msk.f32.mxu1 %vm1704_vm0, %v1705_v1  ;;  %v83_v3 = vld [vmem:[#allocation8 + $0x8] sm:$0xff]  ;;  %v218_v4 = vld [vmem:[#allocation9] sm:$0xff]  ;;  %v84_v7 = vld [vmem:[#allocation8 + $0x10] sm:$0xff] }
  0x4b   :  { %v1329_v5 = vpack.c.bf16 %v83_v3, %v82_v2  ;;  %v219_v6 = vld [vmem:[#allocation9 + $0x8] sm:$0xff]  ;;  %v85_v8 = vld [vmem:[#allocation8 + $0x18] sm:$0xff]  ;;  %v220_v11 = vld [vmem:[#allocation9 + $0x10] sm:$0xff] }
  0x4c   :  { %v1811_v9 = vpack.c.bf16 %v219_v6, %v218_v4  ;;  %v1333_v10 = vpack.c.bf16 %v85_v8, %v84_v7  ;;  %v221_v12 = vld [vmem:[#allocation9 + $0x18] sm:$0xff]  ;;  %v86_v13 = vld [vmem:[#allocation8 + $0x20] sm:$0xff]  ;;  %v87_v14 = vld [vmem:[#allocation8 + $0x28] sm:$0xff] }
  0x4d   :  { %1330 = vmatprep.subr.bf16.mxu0 %v1329_v5  ;;  %v1814_v15 = vpack.c.bf16 %v221_v12, %v220_v11  ;;  %v1337_v16 = vpack.c.bf16 %v87_v14, %v86_v13  ;;  %v222_v17 = vld [vmem:[#allocation9 + $0x20] sm:$0xff]  ;;  %v223_v18 = vld [vmem:[#allocation9 + $0x28] sm:$0xff]  ;;  %v88_v19 = vld [vmem:[#allocation8 + $0x30] sm:$0xff] }
  0x4e   :  { %1332 = vmatpush3.bf16.msra.mxu0 %v1329_v5  ;;  %1363 = vmatpush3.bf16.msra.mxu1 %v1811_v9  ;;  %v89_v20 = vld [vmem:[#allocation8 + $0x38] sm:$0xff]  ;;  %v1818_v21 = vpack.c.bf16 %v223_v18, %v222_v17  ;;  %v224_v23 = vld [vmem:[#allocation9 + $0x30] sm:$0xff]  ;;  %v90_v25 = vld [vmem:[#allocation8 + $0x40] sm:$0xff] }
  0x4f   :  { %1334 = vmatprep.subr.bf16.mxu0 %v1333_v10  ;;  %1364 = vmatprep.subr.bf16.mxu1 %v1703_v0  ;;  %v1341_v22 = vpack.c.bf16 %v89_v20, %v88_v19  ;;  %v225_v24 = vld [vmem:[#allocation9 + $0x38] sm:$0xff]  ;;  %v91_v26 = vld [vmem:[#allocation8 + $0x48] sm:$0xff]  ;;  %v226_v30 = vld [vmem:[#allocation9 + $0x40] sm:$0xff] }
  0x50   :  { %v74_v27 = vld [vmem:[#allocation3] sm:$0xff]  ;;  %v1822_v28 = vpack.c.bf16 %v225_v24, %v224_v23  ;;  %v1345_v29 = vpack.c.bf16 %v91_v26, %v90_v25  ;;  %v227_v31 = vld [vmem:[#allocation9 + $0x48] sm:$0xff]  ;;  %v92_v32 = vld [vmem:[#allocation8 + $0x50] sm:$0xff] }
  0x51   :  { %1037 = vmatprep.mubr.f32.mxu0 %v74_v27  ;;  %v93_v33 = vld [vmem:[#allocation8 + $0x58] sm:$0xff]  ;;  %v1826_v34 = vpack.c.bf16 %v227_v31, %v226_v30  ;;  %v228_v36 = vld [vmem:[#allocation9 + $0x50] sm:$0xff]  ;;  %v94_v38 = vld [vmem:[#allocation8 + $0x60] sm:$0xff] }
  0x52   :  { %1336 = vmatpush3.bf16.msra.mxu0 %v1333_v10  ;;  %1366 = vmatpush3.bf16.msra.mxu1 %v1814_v15  ;;  %v1349_v35 = vpack.c.bf16 %v93_v33, %v92_v32  ;;  %v229_v37 = vld [vmem:[#allocation9 + $0x58] sm:$0xff]  ;;  %v95_v39 = vld [vmem:[#allocation8 + $0x68] sm:$0xff]  ;;  %v230_v42 = vld [vmem:[#allocation9 + $0x60] sm:$0xff] }
  0x53   :  { %1338 = vmatprep.subr.bf16.mxu0 %v1337_v16  ;;  %1367 = vmatprep.subr.bf16.mxu1 %v1703_v0  ;;  %v1830_v40 = vpack.c.bf16 %v229_v37, %v228_v36  ;;  %v1353_v41 = vpack.c.bf16 %v95_v39, %v94_v38  ;;  %v231_v43 = vld [vmem:[#allocation9 + $0x68] sm:$0xff]  ;;  %v96_v44 = vld [vmem:[#allocation8 + $0x70] sm:$0xff]  ;;  %v97_v45 = vld [vmem:[#allocation8 + $0x78] sm:$0xff] }
  0x54   :  { %v1834_v46 = vpack.c.bf16 %v231_v43, %v230_v42  ;;  %v1357_v47 = vpack.c.bf16 %v97_v45, %v96_v44  ;;  %v232_v48 = vld [vmem:[#allocation9 + $0x70] sm:$0xff]  ;;  %v233_v49 = vld [vmem:[#allocation9 + $0x78] sm:$0xff]  ;;  %v75_v51 = vld [vmem:[#allocation3 + $0x8] sm:$0xff] }
  0x55   :  { %v1838_v50 = vpack.c.bf16 %v233_v49, %v232_v48  ;;  %v234_v52 = vld [vmem:[#allocation6] sm:$0xff]  ;;  %v76_v53 = vld [vmem:[#allocation3 + $0x10] sm:$0xff]  ;;  %v77_v54 = vld [vmem:[#allocation3 + $0x18] sm:$0xff] }
  0x56   :  { %1340 = vmatpush3.bf16.msra.mxu0 %v1337_v16  ;;  %1369 = vmatpush3.bf16.msra.mxu1 %v1818_v21  ;;  %v78_v55 = vld [vmem:[#allocation3 + $0x20] sm:$0xff]  ;;  %v79_v56 = vld [vmem:[#allocation3 + $0x28] sm:$0xff]  ;;  %v80_v57 = vld [vmem:[#allocation3 + $0x30] sm:$0xff] }
  0x57   :  { %1342 = vmatprep.subr.bf16.mxu0 %v1341_v22  ;;  %1370 = vmatprep.subr.bf16.mxu1 %v1703_v0  ;;  %v81_v58 = vld [vmem:[#allocation3 + $0x38] sm:$0xff]  ;;  %v1883_v59 = vld [vmem:[%s2009_s4] ss:$0 sm:$0xff]  ;;  %s1706_s4 = smov [#allocation11]  }
  0x58   :  { %s833_s15 = sshll.u32 %s1706_s4, 4  ;;  %s834_s15 = int_to_ptr.vmem [resolvable:$true] %s833_s15 }
  0x59   :  { %s1667_s16 = scalar_lea.vmem %s834_s15, 128  ;;  %p1672_p5 = scmp.lt.s32.totalorder %s834_s15, %s834_s15 }
  0x5a   :  { %1344 = vmatpush3.bf16.msra.mxu0 %v1341_v22  ;;  %1372 = vmatpush3.bf16.msra.mxu1 %v1822_v28  ;;  %p1668_p4 = scmp.ne.s32.totalorder %s834_s15, %s1667_s16  ;;  %p1673_p6 = scmp.lt.s32.totalorder %s1667_s16, %s1667_s16 }
  0x5b   :  { %1346 = vmatprep.subr.bf16.mxu0 %v1345_v29  ;;  %1373 = vmatprep.subr.bf16.mxu1 %v1703_v0 }
  0x5c   :  { %p1674_p7 = por %p1673_p6, %p1672_p5 }
  0x5e   :  { %1348 = vmatpush3.bf16.msra.mxu0 %v1345_v29  ;;  %1375 = vmatpush3.bf16.msra.mxu1 %v1826_v34  ;;  %p1675_p8 = pnand %p1674_p7, %p1668_p4 }
  0x5f   :  { %1350 = vmatprep.subr.bf16.mxu0 %v1349_v35  ;;  %1376 = vmatprep.subr.bf16.mxu1 %v1703_v0 }
  0x62   :  { %1352 = vmatpush3.bf16.msra.mxu0 %v1349_v35  ;;  %1378 = vmatpush3.bf16.msra.mxu1 %v1830_v40 }
  0x63   :  { %1354 = vmatprep.subr.bf16.mxu0 %v1353_v41  ;;  %1379 = vmatprep.subr.bf16.mxu1 %v1703_v0 }
  0x66   :  { %1356 = vmatpush3.bf16.msra.mxu0 %v1353_v41  ;;  %1381 = vmatpush3.bf16.msra.mxu1 %v1834_v46 }
  0x67   :  { %1358 = vmatprep.subr.bf16.mxu0 %v1357_v47  ;;  %1382 = vmatprep.subr.bf16.mxu1 %v1703_v0 }
  0x6a   :  { %1360 = vmatpush3.bf16.msra.mxu0 %v1357_v47  ;;  %1384 = vmatpush3.bf16.msra.mxu1 %v1838_v50 }
  0x6b   :  { %1385 = vmatprep.subr.bf16.mxu0 %v1703_v0  ;;  %1409 = vmatprep.subr.bf16.mxu1 %v1703_v0 }
  0x6d   :  { %1038 = vmatmul.mubr.f32.vlgmr.msra.gmra.mrb[0].mxu0 %v75_v51  ;;  %1082 = vmatmul.mubr.f32.vlgmr.msra.gmra.mrb[0].mxu1 %v234_v52 }
  0x6e   :  { %1387 = vmatpush3.bf16.msra.mxu0 %v1811_v9  ;;  %1411 = vmatpush3.bf16.msra.mxu1 %v1811_v9 }
  0x6f   :  { %1388 = vmatprep.subr.bf16.mxu0 %v1703_v0  ;;  %1412 = vmatprep.subr.bf16.mxu1 %v1703_v0 }
  0x70   :  { %1151 = vmatprep.mubr.msk.f32.mxu1 %vm1704_vm0, %v1705_v1  ;;  %1040 = vmatprep.mubr.f32.mxu0 %v76_v53 }
  0x71   :  { %1041 = vmatmul.mubr.f32.gmra.mrb[2].mxu0 %v77_v54 }
  0x72   :  { %1390 = vmatpush3.bf16.msra.mxu0 %v1814_v15  ;;  %1414 = vmatpush3.bf16.msra.mxu1 %v1814_v15 }
  0x73   :  { %1391 = vmatprep.subr.bf16.mxu0 %v1703_v0  ;;  %1415 = vmatprep.subr.bf16.mxu1 %v1703_v0 }
  0x74   :  { %1043 = vmatprep.mubr.f32.mxu0 %v78_v55 }
  0x75   :  { %1044 = vmatmul.mubr.f32.gmra.mrb[4].mxu0 %v79_v56 }
  0x76   :  { %1393 = vmatpush3.bf16.msra.mxu0 %v1818_v21  ;;  %1417 = vmatpush3.bf16.msra.mxu1 %v1818_v21 }
  0x77   :  { %1394 = vmatprep.subr.bf16.mxu0 %v1703_v0  ;;  %1418 = vmatprep.subr.bf16.mxu1 %v1703_v0 }
  0x78   :  { %1046 = vmatprep.mubr.f32.mxu0 %v80_v57 }
  0x79   :  { %1047 = vmatmul.mubr.f32.gmra.mrb[6].mxu0 %v81_v58 }
  0x7a   :  { %1396 = vmatpush3.bf16.msra.mxu0 %v1822_v28  ;;  %1420 = vmatpush3.bf16.msra.mxu1 %v1822_v28 }
  0x7b   :  { %1397 = vmatprep.subr.bf16.mxu0 %v1703_v0  ;;  %1421 = vmatprep.subr.bf16.mxu1 %v1703_v0 }
  0x7c   :  { %1116 = vmatprep.mubr.msk.f32.mxu0 %vm1704_vm0, %v1705_v1 }
  0x7e   :  { %1399 = vmatpush3.bf16.msra.mxu0 %v1826_v34  ;;  %1423 = vmatpush3.bf16.msra.mxu1 %v1826_v34 }
  0x7f   :  { %1400 = vmatprep.subr.bf16.mxu0 %v1703_v0  ;;  %1424 = vmatprep.subr.bf16.mxu1 %v1703_v0 }
  0x82   :  { %1402 = vmatpush3.bf16.msra.mxu0 %v1830_v40  ;;  %1426 = vmatpush3.bf16.msra.mxu1 %v1830_v40 }
  0x83   :  { %1403 = vmatprep.subr.bf16.mxu0 %v1703_v0  ;;  %1427 = vmatprep.subr.bf16.mxu1 %v1703_v0 }
  0x86   :  { %1405 = vmatpush3.bf16.msra.mxu0 %v1834_v46  ;;  %1429 = vmatpush3.bf16.msra.mxu1 %v1834_v46 }
  0x87   :  { %1406 = vmatprep.subr.bf16.mxu0 %v1703_v0  ;;  %1430 = vmatprep.subr.bf16.mxu1 %v1703_v0 }
  0x8a   :  { %1408 = vmatpush3.bf16.msra.mxu0 %v1838_v50  ;;  %1432 = vmatpush3.bf16.msra.mxu1 %v1838_v50 }
  0x8b   :  { %1433 = vmatprep.subr.bf16.mxu0 %v1703_v0  ;;  %1457 = vmatprep.subr.bf16.mxu1 %v1703_v0 }
 0x140   :  { %v1039_v60 = vpop.f32.mrb[0].mxu0  ;;  %v302_v61 = vpop.f32.mrb[0].mxu1 }
 0x141   :  { %v171_v62 = vpop.f32.mrb[1].mxu0  ;;  %v1083_v63 = vpop.f32.mrb[1].mxu1  ;;  %v177_v12 = vadd.f32 %v1039_v60, %v1883_v59 }
 0x142   :  { %v172_v2 = vadd.f32 %v1883_v59, %v171_v62 }
 0x144   :  { %v306_v3 = vadd.f32 %v302_v61, %v172_v2  ;;  %v1042_v5 = vpop.f32.mrb[2].mxu0 }
 0x145   :  { %v181_v6 = vpop.f32.mrb[3].mxu0  ;;  %v187_v24 = vadd.f32 %v1042_v5, %v1883_v59 }
 0x146   :  { %1563 = vtanh.f32 %v306_v3  ;;  %v182_v18 = vadd.f32 %v1883_v59, %v181_v6 }
 0x148   :  { %v1904_v7 = vpop.f32.mrb[4].mxu0 }
 0x149   :  { %v1906_v8 = vpop.f32.mrb[5].mxu0 }
 0x14a   :  { %v192_v30 = vadd.f32 %v1883_v59, %v1906_v8 }
 0x14c   :  { %v1908_v10 = vpop.f32.mrb[6].mxu0 }
 0x14d   :  { %v1910_v11 = vpop.f32.mrb[7].mxu0 }
 0x150   :  { %v1564_v4 = vpop.eup %1563 }
 0x151   :  { %1117 = vmatmul.mubr.f32.vlgmr.msra.gmra.mrb[8].mxu0 %v1564_v4 }
 0x152   :  { %1435 = vmatpush3.bf16.msra.mxu0 %v1811_v9  ;;  %1186 = vmatprep.mubr.msk.f32.mxu0 %vm1704_vm0, %v1705_v1 }
 0x153   :  { %1436 = vmatprep.subr.bf16.mxu0 %v1703_v0 }
 0x156   :  { %1438 = vmatpush3.bf16.msra.mxu0 %v1814_v15 }
 0x157   :  { %1439 = vmatprep.subr.bf16.mxu0 %v1703_v0 }
 0x15a   :  { %1441 = vmatpush3.bf16.msra.mxu0 %v1818_v21 }
 0x15b   :  { %1442 = vmatprep.subr.bf16.mxu0 %v1703_v0 }
 0x15e   :  { %1444 = vmatpush3.bf16.msra.mxu0 %v1822_v28 }
 0x15f   :  { %1445 = vmatprep.subr.bf16.mxu0 %v1703_v0 }
 0x162   :  { %1447 = vmatpush3.bf16.msra.mxu0 %v1826_v34 }
 0x163   :  { %1448 = vmatprep.subr.bf16.mxu0 %v1703_v0 }
 0x166   :  { %1450 = vmatpush3.bf16.msra.mxu0 %v1830_v40 }
 0x167   :  { %1451 = vmatprep.subr.bf16.mxu0 %v1703_v0 }
 0x16a   :  { %1453 = vmatpush3.bf16.msra.mxu0 %v1834_v46 }
 0x16b   :  { %1454 = vmatprep.subr.bf16.mxu0 %v1703_v0 }
 0x16e   :  { %1456 = vmatpush3.bf16.msra.mxu0 %v1838_v50 }
 0x16f   :  { %1481 = vmatprep.subr.bf16.mxu0 %v1703_v0 }
 0x224   :  { %v376_v13 = vpop.f32.mrb[8].mxu0 }
 0x225   :  { %v380_v14 = vadd.f32 %v376_v13, %v177_v12  ;;  %v1118_v16 = vpop.f32.mrb[9].mxu0 }
 0x227   :  { %1565 = vtanh.f32 %v380_v14 }
 0x231   :  { %v1566_v17 = vpop.eup %1565 }
 0x232   :  { %1152 = vmatmul.mubr.f32.vlgmr.msra.gmra.mrb[2].mxu1 %v1566_v17 }
 0x233   :  { %1459 = vmatpush3.bf16.msra.mxu1 %v1811_v9  ;;  %1221 = vmatprep.mubr.msk.f32.mxu1 %vm1704_vm0, %v1705_v1 }
 0x234   :  { %1460 = vmatprep.subr.bf16.mxu1 %v1703_v0 }
 0x237   :  { %1462 = vmatpush3.bf16.msra.mxu1 %v1814_v15 }
 0x238   :  { %1463 = vmatprep.subr.bf16.mxu1 %v1703_v0 }
 0x23b   :  { %1465 = vmatpush3.bf16.msra.mxu1 %v1818_v21 }
 0x23c   :  { %1466 = vmatprep.subr.bf16.mxu1 %v1703_v0 }
 0x23f   :  { %1468 = vmatpush3.bf16.msra.mxu1 %v1822_v28 }
 0x240   :  { %1469 = vmatprep.subr.bf16.mxu1 %v1703_v0 }
 0x243   :  { %1471 = vmatpush3.bf16.msra.mxu1 %v1826_v34 }
 0x244   :  { %1472 = vmatprep.subr.bf16.mxu1 %v1703_v0 }
 0x247   :  { %1474 = vmatpush3.bf16.msra.mxu1 %v1830_v40 }
 0x248   :  { %1475 = vmatprep.subr.bf16.mxu1 %v1703_v0 }
 0x24b   :  { %1477 = vmatpush3.bf16.msra.mxu1 %v1834_v46 }
 0x24c   :  { %1478 = vmatprep.subr.bf16.mxu1 %v1703_v0 }
 0x24f   :  { %1480 = vmatpush3.bf16.msra.mxu1 %v1838_v50 }
 0x250   :  { %1505 = vmatprep.subr.bf16.mxu1 %v1703_v0 }
 0x305   :  { %v450_v19 = vpop.f32.mrb[2].mxu1 }
 0x306   :  { %v454_v20 = vadd.f32 %v450_v19, %v182_v18  ;;  %v1153_v22 = vpop.f32.mrb[3].mxu1 }
 0x308   :  { %1567 = vtanh.f32 %v454_v20 }
 0x312   :  { %v1568_v23 = vpop.eup %1567 }
 0x313   :  { %1187 = vmatmul.mubr.f32.vlgmr.msra.gmra.mrb[10].mxu0 %v1568_v23 }
 0x314   :  { %1483 = vmatpush3.bf16.msra.mxu0 %v1811_v9  ;;  %1256 = vmatprep.mubr.msk.f32.mxu0 %vm1704_vm0, %v1705_v1 }
 0x315   :  { %1484 = vmatprep.subr.bf16.mxu0 %v1703_v0 }
 0x318   :  { %1486 = vmatpush3.bf16.msra.mxu0 %v1814_v15 }
 0x319   :  { %1487 = vmatprep.subr.bf16.mxu0 %v1703_v0 }
 0x31c   :  { %1489 = vmatpush3.bf16.msra.mxu0 %v1818_v21 }
 0x31d   :  { %1490 = vmatprep.subr.bf16.mxu0 %v1703_v0 }
 0x320   :  { %1492 = vmatpush3.bf16.msra.mxu0 %v1822_v28 }
 0x321   :  { %1493 = vmatprep.subr.bf16.mxu0 %v1703_v0 }
 0x324   :  { %1495 = vmatpush3.bf16.msra.mxu0 %v1826_v34 }
 0x325   :  { %1496 = vmatprep.subr.bf16.mxu0 %v1703_v0 }
 0x328   :  { %1498 = vmatpush3.bf16.msra.mxu0 %v1830_v40 }
 0x329   :  { %1499 = vmatprep.subr.bf16.mxu0 %v1703_v0 }
 0x32c   :  { %1501 = vmatpush3.bf16.msra.mxu0 %v1834_v46 }
 0x32d   :  { %1502 = vmatprep.subr.bf16.mxu0 %v1703_v0 }
 0x330   :  { %1504 = vmatpush3.bf16.msra.mxu0 %v1838_v50 }
 0x331   :  { %1529 = vmatprep.subr.bf16.mxu0 %v1703_v0 }
 0x3e6   :  { %v524_v25 = vpop.f32.mrb[10].mxu0 }
 0x3e7   :  { %v528_v26 = vadd.f32 %v524_v25, %v187_v24  ;;  %v1188_v27 = vpop.f32.mrb[11].mxu0 }
 0x3e9   :  { %1569 = vtanh.f32 %v528_v26 }
 0x3f3   :  { %v1570_v29 = vpop.eup %1569 }
 0x3f4   :  { %1222 = vmatmul.mubr.f32.vlgmr.msra.gmra.mrb[4].mxu1 %v1570_v29 }
 0x3f5   :  { %1507 = vmatpush3.bf16.msra.mxu1 %v1811_v9  ;;  %1291 = vmatprep.mubr.msk.f32.mxu1 %vm1704_vm0, %v1705_v1 }
 0x3f6   :  { %1508 = vmatprep.subr.bf16.mxu1 %v1703_v0 }
 0x3f9   :  { %1510 = vmatpush3.bf16.msra.mxu1 %v1814_v15 }
 0x3fa   :  { %1511 = vmatprep.subr.bf16.mxu1 %v1703_v0 }
 0x3fd   :  { %1513 = vmatpush3.bf16.msra.mxu1 %v1818_v21 }
 0x3fe   :  { %1514 = vmatprep.subr.bf16.mxu1 %v1703_v0 }
 0x401   :  { %1516 = vmatpush3.bf16.msra.mxu1 %v1822_v28 }
 0x402   :  { %1517 = vmatprep.subr.bf16.mxu1 %v1703_v0 }
 0x405   :  { %1519 = vmatpush3.bf16.msra.mxu1 %v1826_v34 }
 0x406   :  { %1520 = vmatprep.subr.bf16.mxu1 %v1703_v0 }
 0x409   :  { %1522 = vmatpush3.bf16.msra.mxu1 %v1830_v40 }
 0x40a   :  { %1523 = vmatprep.subr.bf16.mxu1 %v1703_v0 }
 0x40d   :  { %1525 = vmatpush3.bf16.msra.mxu1 %v1834_v46 }
 0x40e   :  { %1526 = vmatprep.subr.bf16.mxu1 %v1703_v0 }
 0x411   :  { %1528 = vmatpush3.bf16.msra.mxu1 %v1838_v50 }
 0x4c7   :  { %v598_v31 = vpop.f32.mrb[4].mxu1 }
 0x4c8   :  { %v602_v32 = vadd.f32 %v598_v31, %v192_v30  ;;  %v1223_v33 = vpop.f32.mrb[5].mxu1 }
 0x4ca   :  { %1571 = vtanh.f32 %v602_v32 }
 0x4d4   :  { %v1572_v35 = vpop.eup %1571 }
 0x4d5   :  { %1257 = vmatmul.mubr.f32.vlgmr.msra.gmra.mrb[12].mxu0 %v1572_v35 }
 0x4d6   :  { %1531 = vmatpush3.bf16.msra.mxu0 %v1811_v9  ;;  %1326 = vmatprep.mubr.msk.f32.mxu0 %vm1704_vm0, %v1705_v1  ;;  %v197_v1 = vadd.f32 %v1904_v7, %v1883_v59 }
 0x4d7   :  { %1532 = vmatprep.subr.bf16.mxu0 %v1703_v0 }
 0x4da   :  { %1534 = vmatpush3.bf16.msra.mxu0 %v1814_v15 }
 0x4db   :  { %1535 = vmatprep.subr.bf16.mxu0 %v1703_v0 }
 0x4de   :  { %1537 = vmatpush3.bf16.msra.mxu0 %v1818_v21 }
 0x4df   :  { %1538 = vmatprep.subr.bf16.mxu0 %v1703_v0 }
 0x4e2   :  { %1540 = vmatpush3.bf16.msra.mxu0 %v1822_v28 }
 0x4e3   :  { %1541 = vmatprep.subr.bf16.mxu0 %v1703_v0 }
 0x4e6   :  { %1543 = vmatpush3.bf16.msra.mxu0 %v1826_v34  ;;  %v202_v34 = vadd.f32 %v1883_v59, %v1910_v11 }
 0x4e7   :  { %1544 = vmatprep.subr.bf16.mxu0 %v1703_v0 }
 0x4ea   :  { %1546 = vmatpush3.bf16.msra.mxu0 %v1830_v40 }
 0x4eb   :  { %1547 = vmatprep.subr.bf16.mxu0 %v1703_v0 }
 0x4ee   :  { %1549 = vmatpush3.bf16.msra.mxu0 %v1834_v46 }
 0x4ef   :  { %1550 = vmatprep.subr.bf16.mxu0 %v1703_v0  ;;  %v207_v0 = vadd.f32 %v1908_v10, %v1883_v59 }
 0x4f2   :  { %1552 = vmatpush3.bf16.msra.mxu0 %v1838_v50 }
 0x5a8   :  { %v672_v9 = vpop.f32.mrb[12].mxu0 }
 0x5a9   :  { %v676_v15 = vadd.f32 %v672_v9, %v197_v1  ;;  %v1258_v21 = vpop.f32.mrb[13].mxu0 }
 0x5ab   :  { %1573 = vtanh.f32 %v676_v15 }
 0x5b5   :  { %v1574_v28 = vpop.eup %1573 }
 0x5b6   :  { %1292 = vmatmul.mubr.f32.vlgmr.msra.gmra.mrb[6].mxu1 %v1574_v28 }
 0x689   :  { %v746_v36 = vpop.f32.mrb[6].mxu1 }
 0x68a   :  { %v750_v37 = vadd.f32 %v746_v36, %v202_v34  ;;  %v1293_v38 = vpop.f32.mrb[7].mxu1 }
 0x68c   :  { %1575 = vtanh.f32 %v750_v37 }
 0x696   :  { %v1576_v39 = vpop.eup %1575 }
 0x697   :  { %1327 = vmatmul.mubr.f32.vlgmr.msra.gmra.mrb[14].mxu0 %v1576_v39 }
 0x76a   :  { %v820_v40 = vpop.f32.mrb[14].mxu0 }
 0x76b   :  { %v824_v41 = vadd.f32 %v820_v40, %v207_v0  ;;  %v1328_v42 = vpop.f32.mrb[15].mxu0 }
 0x76d   :  { %1577 = vtanh.f32 %v824_v41 }
 0x777   :  { %v1578_v43 = vpop.eup %1577 }
 0x778   :  { %826 = vst [vmem:[#allocation11] sm:$0xff] %v1578_v43 }
 0x779   :  { %1678 = shalt.err (!%p1675_p8)
}
 0x77a   :  { %s1679_s19 = scalar_lea.hbm %s2010_s5, 128 }
 0x77b   :  { %p1680_p9 = scmp.ne.s32.totalorder %s2010_s5, %s1679_s19  ;;  %p1683_p10 = scmp.lt.u32.totalorder %s1679_s19, %s2010_s5 }
 0x77d   :  { %p1685_p11 = pnand %p1683_p10, %p1680_p9 }
 0x77f   :  { %1688 = shalt.err (!%p1685_p11)
}
 0x780   :  { %836 = dma.vmem_to_hbm [thread:$0]  %s834_s15, 128, %s2010_s5, [#allocation5]  }
 0x781   :  { %1695 = dma.done.wait [#allocation5], 128  }
 0x782   :  { %1696 = vsyncadd [#allocation5], 4294967168 }
 0x783   :  { %840 = vsyncpa [#allocation4], 1 }
 0x784   :  { %841 = vsyncpa [#allocation7], 1 }
 0x785   :  { %842 = vsyncpa [#allocation10], 1 }
 0x786   :  { %843 = vsyncpa [#allocation5], 1 }

</bundles_post_ra>
